<compile_context>
chip_gen: v7x
topology: tpu7x:2x2x1
jax: 0.10.0
libtpu: 0.0.40
codegen_flags: <defaults>
</compile_context>

<pallas_src>
import math
import jax
import jax.numpy as jnp
from jax.experimental import pallas as pl
from jax.experimental.pallas import tpu as pltpu


def _make_kernel(matmul_dtype):
    def qnet_kernel(x_ref, w1_ref, b1_ref, w2_ref, b2_ref, o_ref):
        # Two MXU matmuls (operands in matmul_dtype, f32 accumulate) + f32
        # bias/ReLU, all in-VMEM.
        x = x_ref[...].astype(matmul_dtype)                        # (TB, state_dim)
        h = jnp.dot(x, w1_ref[...], preferred_element_type=jnp.float32)
        h = jnp.maximum(h + b1_ref[...], 0.0)                      # f32 bias + ReLU
        y = jnp.dot(h.astype(matmul_dtype), w2_ref[...],
                    preferred_element_type=jnp.float32)
        o_ref[...] = (y + b2_ref[...]).astype(o_ref.dtype)
    return qnet_kernel


def _cost_estimate(B, state_dim, hidden, out_dim, x_itemsize, w_itemsize):
    flops = 2 * B * (state_dim * hidden + hidden * out_dim)
    bytes_accessed = (
        B * state_dim * x_itemsize                                    # x
        + (state_dim * hidden + hidden * out_dim) * w_itemsize        # w1, w2
        + (hidden + out_dim) * 4                                      # b1, b2
        + B * out_dim * 4                                             # out
    )
    return pl.CostEstimate(flops=flops, transcendentals=0,
                           bytes_accessed=bytes_accessed)


def qnetwork_128_forward(x, w1, b1, w2, b2, *, batch_tile=4096,
                         matmul_dtype=jnp.bfloat16, lane_dense_out=False):
    """x: (B, state_dim). Returns (B, nb_actions) f32.

    matmul_dtype: dtype fed to the MXU (bf16 default; jnp.float32 for exact
    parity with the f32 PyTorch reference). Accumulation is always f32.
    """
    B, state_dim = x.shape
    hidden = w1.shape[1]
    nb_actions = w2.shape[1]

    # Weights/biases are ~10 KB: casting/padding them once is negligible next to
    # streaming x, and they stay VMEM-resident across the grid.
    w1c = w1.astype(matmul_dtype)
    w2c = w2.astype(matmul_dtype)
    b1c = b1.astype(jnp.float32)
    b2c = b2.astype(jnp.float32)

    out_dim = nb_actions
    if lane_dense_out:
        # Zero-pad the output feature dim to a full 128-lane vreg: the MXU
        # computes the padded columns for free and stores become unmasked vst.
        out_dim = 128
        w2c = jnp.pad(w2c, ((0, 0), (0, out_dim - nb_actions)))
        b2c = jnp.pad(b2c, ((0, 0), (0, out_dim - nb_actions)))

    kernel = _make_kernel(matmul_dtype)
    cost = _cost_estimate(B, state_dim, hidden, out_dim,
                          x.dtype.itemsize, w1c.dtype.itemsize)

    if B <= batch_tile:
        # Small/medium batch: single whole-array VMEM blocks, no grid machinery.
        # (At batch_tile=4096 the biggest buffer is x at <=256 KB f32, far under
        # even v5e's 16 MiB scoped-VMEM default, so no vmem_limit_bytes needed.)
        vmem = pl.BlockSpec(memory_space=pltpu.MemorySpace.VMEM)
        out = pl.pallas_call(
            kernel,
            out_shape=jax.ShapeDtypeStruct((B, out_dim), jnp.float32),
            in_specs=[vmem, vmem, vmem, vmem, vmem],
            out_specs=vmem,
            cost_estimate=cost,
        )(x, w1c, b1c, w2c, b2c)
    else:
        # Large batch: stream the batch axis (ragged last block handled by
        # Pallas: overhang rows are masked on write), weights/biases resident.
        TB = batch_tile
        out = pl.pallas_call(
            kernel,
            out_shape=jax.ShapeDtypeStruct((B, out_dim), jnp.float32),
            grid=(pl.cdiv(B, TB),),
            in_specs=[
                pl.BlockSpec((TB, state_dim), lambda i: (i, 0)),       # streams
                pl.BlockSpec((state_dim, hidden), lambda i: (0, 0)),   # resident
                pl.BlockSpec((1, hidden), lambda i: (0, 0)),           # resident
                pl.BlockSpec((hidden, out_dim), lambda i: (0, 0)),     # resident
                pl.BlockSpec((1, out_dim), lambda i: (0, 0)),          # resident
            ],
            out_specs=pl.BlockSpec((TB, out_dim), lambda i: (i, 0)),
            compiler_params=pltpu.CompilerParams(
                dimension_semantics=("parallel",),   # v7x: shard tiles over 2 TCs
            ),
            cost_estimate=cost,
        )(x, w1c, b1c, w2c, b2c)

    if lane_dense_out:
        out = out[:, :nb_actions]
    return out


def kaiming_uniform(key, fan_in, fan_out):
    # torch.nn.init.kaiming_uniform_ default: a=0, fan_in mode, gain=sqrt(2)
    # bound = sqrt(6 / fan_in); torch weight shape (out, in) -> we store (in, out).
    bound = math.sqrt(6.0 / fan_in)
    w = jax.random.uniform(key, (fan_out, fan_in), jnp.float32, -bound, bound)
    return w.T  # (in, out)


def init_params(key, state_dim, hidden, nb_actions):
    k1, k2 = jax.random.split(key)
    w1 = kaiming_uniform(k1, state_dim, hidden)      # (state_dim, 128)
    b1 = jnp.zeros((1, hidden), jnp.float32)         # bias.data.fill_(0.0)
    w2 = kaiming_uniform(k2, hidden, nb_actions)     # (128, nb_actions)
    b2 = jnp.zeros((1, nb_actions), jnp.float32)
    return w1, b1, w2, b2


if __name__ == "__main__":
    state_dim = 16
    nb_actions = 4
    hidden = 128

    key = jax.random.PRNGKey(0)
    kx1, kx2, kp = jax.random.split(key, 3)
    w1, b1, w2, b2 = init_params(kp, state_dim, hidden, nb_actions)

    def ref_fwd(x):
        return jnp.maximum(x @ w1 + b1, 0.0) @ w2 + b2

    # 1) Small-batch path, exact f32 matmuls (no grid, whole-array VMEM blocks).
    x_small = jax.random.normal(kx1, (8, state_dim), jnp.float32)
    out_small = jax.block_until_ready(
        qnetwork_128_forward(x_small, w1, b1, w2, b2, matmul_dtype=jnp.float32))
    assert out_small.shape == (8, nb_actions)
    assert jnp.allclose(out_small, ref_fwd(x_small), atol=1e-5, rtol=1e-5)

    # 1b) Same path with the lane-dense (128-wide) output experiment, still f32.
    out_dense = jax.block_until_ready(
        qnetwork_128_forward(x_small, w1, b1, w2, b2,
                             matmul_dtype=jnp.float32, lane_dense_out=True))
    assert out_dense.shape == (8, nb_actions)
    assert jnp.allclose(out_dense, ref_fwd(x_small), atol=1e-5, rtol=1e-5)

    # 2) Batch-tiled path: non-multiple batch exercises the ragged last block
    #    (no pad/slice), weights resident, parallel grid axis, bf16 MXU feed.
    x_big = jax.random.normal(kx2, (600, state_dim), jnp.float32)
    out_big = jax.block_until_ready(
        qnetwork_128_forward(x_big, w1, b1, w2, b2, batch_tile=256,
                             matmul_dtype=jnp.bfloat16))
    assert out_big.shape == (600, nb_actions)
    # bf16 operands (f32 accumulate) -> loosened tolerance vs the f32 reference.
    assert jnp.allclose(out_big, ref_fwd(x_big), atol=5e-2, rtol=5e-2)

    print("KERNEL_OK")
</pallas_src>

<mosaic_0001>
module attributes {stable_mosaic.version = 11 : i64} {
  func.func @qnet_kernel(%arg0: memref<8x16xf32, #tpu.memory_space<vmem>>, %arg1: memref<16x128xf32, #tpu.memory_space<vmem>>, %arg2: memref<1x128xf32, #tpu.memory_space<vmem>>, %arg3: memref<128x4xf32, #tpu.memory_space<vmem>>, %arg4: memref<1x4xf32, #tpu.memory_space<vmem>>, %arg5: memref<8x4xf32, #tpu.memory_space<vmem>>) attributes {dimension_semantics = [], scalar_prefetch = 0 : i64, scratch_operands = 0 : i64, tpu.core_type = #tpu.core_type<tc>} {
    %c0 = arith.constant 0 : index
    %c0_0 = arith.constant 0 : index
    %0 = vector.load %arg0[%c0, %c0_0] : memref<8x16xf32, #tpu.memory_space<vmem>>, vector<8x16xf32>
    %c0_1 = arith.constant 0 : index
    %c0_2 = arith.constant 0 : index
    %1 = vector.load %arg1[%c0_1, %c0_2] : memref<16x128xf32, #tpu.memory_space<vmem>>, vector<16x128xf32>
    %cst = arith.constant dense<0.000000e+00> : vector<8x128xf32>
    %2 = tpu.matmul %0, %1, %cst {dimension_numbers = #tpu.dot_dimension_numbers<[1], [0], [0], [1], [0, 0, 1, 1], [], []>} : vector<8x16xf32>, vector<16x128xf32>, vector<8x128xf32> -> vector<8x128xf32>
    %c0_3 = arith.constant 0 : index
    %c0_4 = arith.constant 0 : index
    %3 = vector.load %arg2[%c0_3, %c0_4] : memref<1x128xf32, #tpu.memory_space<vmem>>, vector<1x128xf32>
    %4 = vector.broadcast %3 : vector<1x128xf32> to vector<8x128xf32>
    %5 = arith.addf %2, %4 : vector<8x128xf32>
    %cst_5 = arith.constant 0.000000e+00 : f32
    %6 = vector.broadcast %cst_5 : f32 to vector<8x128xf32>
    %7 = arith.maximumf %5, %6 : vector<8x128xf32>
    %c0_6 = arith.constant 0 : index
    %c0_7 = arith.constant 0 : index
    %8 = vector.load %arg3[%c0_6, %c0_7] : memref<128x4xf32, #tpu.memory_space<vmem>>, vector<128x4xf32>
    %cst_8 = arith.constant dense<0.000000e+00> : vector<8x4xf32>
    %9 = tpu.matmul %7, %8, %cst_8 {dimension_numbers = #tpu.dot_dimension_numbers<[1], [0], [0], [1], [0, 0, 1, 1], [], []>} : vector<8x128xf32>, vector<128x4xf32>, vector<8x4xf32> -> vector<8x4xf32>
    %c0_9 = arith.constant 0 : index
    %c0_10 = arith.constant 0 : index
    %10 = vector.load %arg4[%c0_9, %c0_10] : memref<1x4xf32, #tpu.memory_space<vmem>>, vector<1x4xf32>
    %11 = vector.broadcast %10 : vector<1x4xf32> to vector<8x4xf32>
    %12 = arith.addf %9, %11 : vector<8x4xf32>
    %c0_11 = arith.constant 0 : index
    %c0_12 = arith.constant 0 : index
    %13 = vector.load %arg5[%c0_11, %c0_12] : memref<8x4xf32, #tpu.memory_space<vmem>>, vector<8x4xf32>
    tpu.vector_store %arg5[%c0_11, %c0_12], %12 {strides = array<i32>} : memref<8x4xf32, #tpu.memory_space<vmem>>, vector<8x4xf32>,
    return
  }
}

</mosaic_0001>

<bundles_post_ra>
// kernel: tpu_custom_call.1
= control target key start
LH: loop header
LB: loop body
LE: loop exit
PB: predicated region body
PF: predicated region fallthrough
CT: control target
= control target key end

     0   :  { %v299_v0 = vmov 0.0|0.0   ;;  %vm300_vm0 = vmmov 0   ;;  %v301_v3 = vmov 0.0   ;;  %vm30_vm1 = vcmask 130048   ;;  %s398_s1 = inlined_call_operand.vmem [shape: f32[16,128], index: 1, kind: input, shape index: {}]   ;;  %s399_s3 = inlined_call_operand.vmem [shape: f32[128,4], index: 3, kind: input, shape index: {}]   ;;  %s400_s0 = inlined_call_operand.vmem [shape: f32[8,16], index: 0, kind: input, shape index: {}]   ;;  %s401_s2 = inlined_call_operand.vmem [shape: f32[1,128], index: 2, kind: input, shape index: {}]   ;;  %s402_s4 = inlined_call_operand.vmem [shape: f32[1,4], index: 4, kind: input, shape index: {}]   ;;  %s403_s5 = inlined_call_operand.vmem [shape: f32[8,4], index: 5, kind: output, shape index: {}]  }
   0x1   :  { %269 = vmatprep.subr.bf16.mxu0 %v299_v0  ;;  %v21_v1 = vld [vmem:[%s398_s1] sm:$0xff]  ;;  %v22_v2 = vld [vmem:[%s398_s1 + $0x8] sm:$0xff]  ;;  %231 = vmatprep.mubr.msk.f32.mxu0 %vm300_vm0, %v301_v3  ;;  %v107_v7 = vld [vmem:[%s399_s3 + $0x10] sm:$0xff]  ;;  %vm198_vm2 = vcmask 31744  }
   0x2   :  { %v270_v4 = vpack.c.bf16 %v22_v2, %v21_v1  ;;  %272 = vmatprep.subr.bf16.mxu1 %v299_v0  ;;  %v105_v5 = vld [vmem:[%s399_s3] sm:$0xff]  ;;  %v106_v6 = vld [vmem:[%s399_s3 + $0x8] sm:$0xff]  ;;  %266 = vmatprep.mubr.msk.f32.mxu1 %vm300_vm0, %v301_v3  ;;  %v108_v9 = vld [vmem:[%s399_s3 + $0x18] sm:$0xff] }
   0x3   :  { %v273_v8 = vpack.c.bf16 %v106_v6, %v105_v5  ;;  %v20_v10 = vld [vmem:[%s400_s0] sm:$0xff]  ;;  %v276_v11 = vpack.c.bf16 %v108_v9, %v107_v7  ;;  %v110_v13 = vld [vmem:[%s399_s3 + $0x28] sm:$0xff]  ;;  %v111_v15 = vld [vmem:[%s399_s3 + $0x30] sm:$0xff] }
   0x4   :  { %271 = vmatpush3.bf16.msra.mxu0 %v270_v4  ;;  %v109_v12 = vld [vmem:[%s399_s3 + $0x20] sm:$0xff]  ;;  %v112_v16 = vld [vmem:[%s399_s3 + $0x38] sm:$0xff]  ;;  %v114_v19 = vld [vmem:[%s399_s3 + $0x48] sm:$0xff] }
   0x5   :  { %274 = vmatpush3.bf16.msra.mxu1 %v273_v8  ;;  %v279_v14 = vpack.c.bf16 %v110_v13, %v109_v12  ;;  %v282_v17 = vpack.c.bf16 %v112_v16, %v111_v15  ;;  %v113_v18 = vld [vmem:[%s399_s3 + $0x40] sm:$0xff]  ;;  %v115_v21 = vld [vmem:[%s399_s3 + $0x50] sm:$0xff]  ;;  %v116_v22 = vld [vmem:[%s399_s3 + $0x58] sm:$0xff] }
   0x6   :  { %275 = vmatprep.subr.bf16.mxu1 %v299_v0  ;;  %v285_v20 = vpack.c.bf16 %v114_v19, %v113_v18  ;;  %v288_v23 = vpack.c.bf16 %v116_v22, %v115_v21  ;;  %v117_v24 = vld [vmem:[%s399_s3 + $0x60] sm:$0xff]  ;;  %v118_v25 = vld [vmem:[%s399_s3 + $0x68] sm:$0xff]  ;;  %v119_v27 = vld [vmem:[%s399_s3 + $0x70] sm:$0xff] }
   0x7   :  { %232 = vmatmul.mubr.msk.f32.vlgmr.msra.gmra.mrb[0].mxu0 %vm30_vm1, %v20_v10  ;;  %v291_v26 = vpack.c.bf16 %v118_v25, %v117_v24  ;;  %v120_v28 = vld [vmem:[%s399_s3 + $0x78] sm:$0xff]  ;;  %v204_v30 = vld [vmem:[%s401_s2] ss:$0 sm:$0xff] }
   0x8   :  { %v294_v29 = vpack.c.bf16 %v120_v28, %v119_v27  ;;  %v206_v35 = vld [vmem:[%s402_s4] ss:$0 sm:$0xff] }
   0x9   :  { %277 = vmatpush3.bf16.msra.mxu1 %v276_v11 }
   0xa   :  { %278 = vmatprep.subr.bf16.mxu1 %v299_v0 }
   0xd   :  { %280 = vmatpush3.bf16.msra.mxu1 %v279_v14 }
   0xe   :  { %281 = vmatprep.subr.bf16.mxu1 %v299_v0 }
  0x11   :  { %283 = vmatpush3.bf16.msra.mxu1 %v282_v17 }
  0x12   :  { %284 = vmatprep.subr.bf16.mxu1 %v299_v0 }
  0x15   :  { %286 = vmatpush3.bf16.msra.mxu1 %v285_v20 }
  0x16   :  { %287 = vmatprep.subr.bf16.mxu1 %v299_v0 }
  0x19   :  { %289 = vmatpush3.bf16.msra.mxu1 %v288_v23 }
  0x1a   :  { %290 = vmatprep.subr.bf16.mxu1 %v299_v0 }
  0x1d   :  { %292 = vmatpush3.bf16.msra.mxu1 %v291_v26 }
  0x1e   :  { %293 = vmatprep.subr.bf16.mxu1 %v299_v0 }
  0x21   :  { %295 = vmatpush3.bf16.msra.mxu1 %v294_v29 }
  0xda   :  { %v100_v31 = vpop.f32.mrb[0].mxu0 }
  0xdb   :  { %v101_v32 = vadd.f32 %v204_v30, %v100_v31  ;;  %v233_v33 = vpop.f32.mrb[1].mxu0 }
  0xdd   :  { %v104_v34 = vmax.f32 %v101_v32, 0.0 }
  0xdf   :  { %267 = vmatmul.mubr.f32.vlgmr.msra.gmra.mrb[0].mxu1 %v104_v34 }
 0x1b2   :  { %v194_v36 = vpop.f32.mrb[0].mxu1 }
 0x1b3   :  { %v195_v37 = vadd.f32 %v206_v35, %v194_v36  ;;  %v268_v38 = vpop.f32.mrb[1].mxu1 }
 0x1b5   :  { %199 = vst.msk [vmem:[%s403_s5] sm:$0xff] %vm198_vm2, %v195_v37 }

</bundles_post_ra>
